<compile_context>
chip_gen: v5e
topology: v5e:2x2
jax: 0.10.0
libtpu: 0.0.40
codegen_flags: <defaults>
</compile_context>

<pallas_src>
import math
import functools

import jax
import jax.numpy as jnp
from jax.experimental import pallas as pl
from jax.experimental.pallas import tpu as pltpu


def mha_kernel(x_ref, mask_ref,
               wq_ref, bq_ref, wk_ref, bk_ref, wv_ref, bv_ref,
               wd_ref, bd_ref, gamma_ref, beta_ref,
               o_ref, ctx_ref,
               *, n_heads, head_dim, seq_len, eps):
    rows, hidden = x_ref.shape            # rows = tb * seq_len (packed batch tile)
    tb = rows // seq_len
    mxu_dtype = wq_ref.dtype              # weights already cast in the wrapper

    x = x_ref[...].astype(jnp.float32)    # fp32 copy kept for the residual path
    xm = x.astype(mxu_dtype)              # MXU-precision activations
    mask = mask_ref[...].astype(jnp.float32)   # (tb, Sm, S), Sm in {1, S}

    inv_scale = 1.0 / math.sqrt(head_dim)

    # --- QKV projections, batched over tb*seq_len rows (MXU, fp32 accum) ---
    q = (jnp.dot(xm, wq_ref[...], preferred_element_type=jnp.float32)
         + bq_ref[0]) * inv_scale          # scale folded into Q (S*D work, not H*S*S)
    k = jnp.dot(xm, wk_ref[...], preferred_element_type=jnp.float32) + bk_ref[0]
    v = jnp.dot(xm, wv_ref[...], preferred_element_type=jnp.float32) + bv_ref[0]
    qm = q.astype(mxu_dtype)
    km = k.astype(mxu_dtype)
    vm = v.astype(mxu_dtype)

    # --- attention per (batch element, head) via static lane/row slices ---
    for b in range(tb):
        r0 = b * seq_len
        madd = mask[b]                     # (Sm, S); broadcasts over query rows
        for h in range(n_heads):
            c0 = h * head_dim
            qh = qm[r0:r0 + seq_len, c0:c0 + head_dim]   # (S, hd)
            kh = km[r0:r0 + seq_len, c0:c0 + head_dim]
            vh = vm[r0:r0 + seq_len, c0:c0 + head_dim]

            # scores = qh @ kh^T without materializing a transpose
            s = jax.lax.dot_general(qh, kh, (((1,), (1,)), ((), ())),
                                    preferred_element_type=jnp.float32)  # (S, S)
            s = s + madd

            # max-stabilized softmax; divide moved to the EUP reciprocal slot
            m = jnp.max(s, axis=-1, keepdims=True)
            e = jnp.exp(s - m)
            p = e * pl.reciprocal(jnp.sum(e, axis=-1, keepdims=True), approx=True)
            # attn_dropout: identity (eval mode)

            # context for this head written straight into the packed layout
            ctx_ref[r0:r0 + seq_len, c0:c0 + head_dim] = jnp.dot(
                p.astype(mxu_dtype), vh, preferred_element_type=jnp.float32)

    # --- output projection + residual + LayerNorm (fp32) ---
    ctx = ctx_ref[...].astype(mxu_dtype)
    h = jnp.dot(ctx, wd_ref[...], preferred_element_type=jnp.float32) + bd_ref[0]
    # out_dropout: identity (eval mode)
    h = h + x

    mu = jnp.mean(h, axis=-1, keepdims=True)
    var = jnp.mean((h - mu) ** 2, axis=-1, keepdims=True)
    out = (h - mu) * jax.lax.rsqrt(var + eps) * gamma_ref[0] + beta_ref[0]
    o_ref[...] = out.astype(o_ref.dtype)


def _pick_batch_tile(batch, seq, target_rows=256):
    """Largest batch tile (divisor of batch) giving ~target_rows MXU rows,
    keeping the packed row block either a multiple of 8 or the full array."""
    tb = min(batch, max(1, target_rows // max(seq, 1)))
    for cand in range(tb, 0, -1):
        if batch % cand == 0 and ((cand * seq) % 8 == 0 or cand == batch):
            return cand
    return batch


def multi_head_attention(x, mask, params, *, n_heads, eps,
                         mxu_dtype=jnp.bfloat16):
    """x: (B, S, D) f32; mask: (B, 1, S) or (B, S, S) f32 additive mask."""
    B, S, D = x.shape
    head_dim = D // n_heads
    wq, bq, wk, bk, wv, bv, wd, bd, gamma, beta = params

    tb = _pick_batch_tile(B, S)
    rows = tb * S
    Sm = mask.shape[1]

    # Low-precision MXU weight copies (halves weight DMA/VMEM bytes for bf16).
    wq_m, wk_m, wv_m, wd_m = (w.astype(mxu_dtype) for w in (wq, wk, wv, wd))
    # Biases / LN params reshaped to (1, D) for 2-D VMEM tiles (fp32).
    bq2, bk2, bv2, bd2 = (b.reshape(1, D) for b in (bq, bk, bv, bd))
    gamma2, beta2 = gamma.reshape(1, D), beta.reshape(1, D)

    # Packed (B*S, D) layout at the kernel boundary -> lane-dense, no in-kernel
    # head transposes and the projection matmuls see tb*S rows at once.
    x2 = x.reshape(B * S, D)

    kernel = functools.partial(mha_kernel, n_heads=n_heads, head_dim=head_dim,
                               seq_len=S, eps=eps)

    full_w = pl.BlockSpec((D, D), lambda i: (0, 0))
    full_v = pl.BlockSpec((1, D), lambda i: (0, 0))

    out2 = pl.pallas_call(
        kernel,
        out_shape=jax.ShapeDtypeStruct((B * S, D), x.dtype),
        grid_spec=pltpu.PrefetchScalarGridSpec(
            num_scalar_prefetch=0,
            grid=(B // tb,),
            in_specs=[
                pl.BlockSpec((rows, D), lambda i: (i, 0)),      # x (packed rows)
                pl.BlockSpec((tb, Sm, S), lambda i: (i, 0, 0)),  # additive mask
                full_w, full_v,   # wq, bq
                full_w, full_v,   # wk, bk
                full_w, full_v,   # wv, bv
                full_w, full_v,   # wd, bd
                full_v, full_v,   # gamma, beta
            ],
            out_specs=pl.BlockSpec((rows, D), lambda i: (i, 0)),
            scratch_shapes=[pltpu.VMEM((rows, D), jnp.float32)],  # context scratch
        ),
        compiler_params=pltpu.CompilerParams(
            dimension_semantics=("parallel",),
            vmem_limit_bytes=32 * 1024 * 1024,
        ),
    )(x2, mask, wq_m, bq2, wk_m, bk2, wv_m, bv2, wd_m, bd2, gamma2, beta2)

    return out2.reshape(B, S, D)


def reference(x, mask, params, *, n_heads, eps):
    """Pure-JAX fp32 reference mirroring the PyTorch forward (eval mode)."""
    wq, bq, wk, bk, wv, bv, wd, bd, gamma, beta = params
    B, S, D = x.shape
    hd = D // n_heads

    def split(t):
        return t.reshape(B, S, n_heads, hd).transpose(0, 2, 1, 3)

    q = split(x @ wq + bq)
    k = split(x @ wk + bk)
    v = split(x @ wv + bv)
    scores = jnp.einsum('bhqd,bhkd->bhqk', q, k) / math.sqrt(hd)
    scores = scores + mask[:, None, :, :]          # broadcast over heads (and rows)
    probs = jax.nn.softmax(scores, axis=-1)
    ctx = jnp.einsum('bhqk,bhkd->bhqd', probs, v)
    ctx = ctx.transpose(0, 2, 1, 3).reshape(B, S, D)
    h = ctx @ wd + bd + x
    mu = jnp.mean(h, axis=-1, keepdims=True)
    var = jnp.mean((h - mu) ** 2, axis=-1, keepdims=True)
    return (h - mu) / jnp.sqrt(var + eps) * gamma + beta


if __name__ == "__main__":
    # Module config
    n_heads = 4
    hidden_size = 32
    hidden_dropout_prob = 0.1   # identity in eval mode
    attn_dropout_prob = 0.1     # identity in eval mode
    layer_norm_eps = 1e-12

    # Small shapes
    B, S, D = 2, 8, hidden_size

    key = jax.random.PRNGKey(0)
    ks = jax.random.split(key, 12)

    scale = 1.0 / math.sqrt(D)
    wq = jax.random.normal(ks[0], (D, D), jnp.float32) * scale
    bq = jax.random.normal(ks[1], (D,), jnp.float32) * 0.01
    wk = jax.random.normal(ks[2], (D, D), jnp.float32) * scale
    bk = jax.random.normal(ks[3], (D,), jnp.float32) * 0.01
    wv = jax.random.normal(ks[4], (D, D), jnp.float32) * scale
    bv = jax.random.normal(ks[5], (D,), jnp.float32) * 0.01
    wd = jax.random.normal(ks[6], (D, D), jnp.float32) * scale
    bd = jax.random.normal(ks[7], (D,), jnp.float32) * 0.01
    gamma = jnp.ones((D,), jnp.float32)
    beta = jnp.zeros((D,), jnp.float32)
    params = (wq, bq, wk, bk, wv, bv, wd, bd, gamma, beta)

    x = jax.random.normal(ks[8], (B, S, D), jnp.float32)
    # Additive attention mask kept as (B, 1, S): 0 visible, -10000 masked.
    visible = jax.random.bernoulli(ks[9], 0.9, (B, 1, S)).astype(jnp.float32)
    mask = (1.0 - visible) * -10000.0

    ref = reference(x, mask, params, n_heads=n_heads, eps=layer_norm_eps)

    # Default (bf16-MXU) path — fp32 accumulation, fp32 softmax/LayerNorm.
    out_bf16 = multi_head_attention(x, mask, params,
                                    n_heads=n_heads, eps=layer_norm_eps)
    # Exact fp32-MXU path for a tighter structural correctness check.
    out_f32 = multi_head_attention(x, mask, params,
                                   n_heads=n_heads, eps=layer_norm_eps,
                                   mxu_dtype=jnp.float32)
    out_bf16, out_f32 = jax.block_until_ready((out_bf16, out_f32))

    assert out_bf16.shape == (B, S, D) and out_f32.shape == (B, S, D)

    err_f32 = float(jnp.max(jnp.abs(out_f32 - ref)))
    err_bf16 = float(jnp.max(jnp.abs(out_bf16 - ref)))
    assert jnp.allclose(out_f32, ref, rtol=1e-2, atol=1e-2), \
        f"fp32 path max abs err {err_f32}"
    assert jnp.allclose(out_bf16, ref, rtol=5e-2, atol=7.5e-2), \
        f"bf16 path max abs err {err_bf16}"

    print("KERNEL_OK")
</pallas_src>

<mosaic_0001>
module attributes {stable_mosaic.version = 11 : i64} {
  func.func @mha_kernel(%arg0: i32, %arg1: memref<16x32xf32, #tpu.memory_space<vmem>>, %arg2: memref<2x1x8xf32, #tpu.memory_space<vmem>>, %arg3: memref<32x32xbf16, #tpu.memory_space<vmem>>, %arg4: memref<1x32xf32, #tpu.memory_space<vmem>>, %arg5: memref<32x32xbf16, #tpu.memory_space<vmem>>, %arg6: memref<1x32xf32, #tpu.memory_space<vmem>>, %arg7: memref<32x32xbf16, #tpu.memory_space<vmem>>, %arg8: memref<1x32xf32, #tpu.memory_space<vmem>>, %arg9: memref<32x32xbf16, #tpu.memory_space<vmem>>, %arg10: memref<1x32xf32, #tpu.memory_space<vmem>>, %arg11: memref<1x32xf32, #tpu.memory_space<vmem>>, %arg12: memref<1x32xf32, #tpu.memory_space<vmem>>, %arg13: memref<16x32xf32, #tpu.memory_space<vmem>>, %arg14: memref<16x32xf32, #tpu.memory_space<vmem>>) attributes {dimension_semantics = [#tpu.dimension_semantics<parallel>], iteration_bounds = array<i64: 1>, scalar_prefetch = 0 : i64, scratch_operands = 1 : i64, tpu.core_type = #tpu.core_type<tc>, window_params = [{transform_indices = @transform_0, window_bounds = array<i64: 16, 32>}, {transform_indices = @transform_1, window_bounds = array<i64: 2, 1, 8>}, {pipeline_mode = #tpu.pipeline_mode<synchronous>, transform_indices = @transform_2, window_bounds = array<i64: 32, 32>}, {pipeline_mode = #tpu.pipeline_mode<synchronous>, transform_indices = @transform_3, window_bounds = array<i64: 1, 32>}, {pipeline_mode = #tpu.pipeline_mode<synchronous>, transform_indices = @transform_4, window_bounds = array<i64: 32, 32>}, {pipeline_mode = #tpu.pipeline_mode<synchronous>, transform_indices = @transform_5, window_bounds = array<i64: 1, 32>}, {pipeline_mode = #tpu.pipeline_mode<synchronous>, transform_indices = @transform_6, window_bounds = array<i64: 32, 32>}, {pipeline_mode = #tpu.pipeline_mode<synchronous>, transform_indices = @transform_7, window_bounds = array<i64: 1, 32>}, {pipeline_mode = #tpu.pipeline_mode<synchronous>, transform_indices = @transform_8, window_bounds = array<i64: 32, 32>}, {pipeline_mode = #tpu.pipeline_mode<synchronous>, transform_indices = @transform_9, window_bounds = array<i64: 1, 32>}, {pipeline_mode = #tpu.pipeline_mode<synchronous>, transform_indices = @transform_10, window_bounds = array<i64: 1, 32>}, {pipeline_mode = #tpu.pipeline_mode<synchronous>, transform_indices = @transform_11, window_bounds = array<i64: 1, 32>}, {transform_indices = @transform_12, window_bounds = array<i64: 16, 32>}]} {
    %c0 = arith.constant 0 : index
    %c0_0 = arith.constant 0 : index
    %0 = vector.load %arg1[%c0, %c0_0] : memref<16x32xf32, #tpu.memory_space<vmem>>, vector<16x32xf32>
    %1 = arith.truncf %0 : vector<16x32xf32> to vector<16x32xbf16>
    %c0_1 = arith.constant 0 : index
    %c0_2 = arith.constant 0 : index
    %c0_3 = arith.constant 0 : index
    %2 = vector.load %arg2[%c0_1, %c0_2, %c0_3] : memref<2x1x8xf32, #tpu.memory_space<vmem>>, vector<2x1x8xf32>
    %c0_4 = arith.constant 0 : index
    %c0_5 = arith.constant 0 : index
    %3 = vector.load %arg3[%c0_4, %c0_5] : memref<32x32xbf16, #tpu.memory_space<vmem>>, vector<32x32xbf16>
    %cst = arith.constant dense<0.000000e+00> : vector<16x32xf32>
    %4 = tpu.matmul %1, %3, %cst {dimension_numbers = #tpu.dot_dimension_numbers<[1], [0], [0], [1], [0, 0, 1, 1], [], []>} : vector<16x32xbf16>, vector<32x32xbf16>, vector<16x32xf32> -> vector<16x32xf32>
    %c0_6 = arith.constant 0 : index
    %c0_7 = arith.constant 0 : index
    %5 = vector.load %arg4[%c0_6, %c0_7] : memref<1x32xf32, #tpu.memory_space<vmem>>, vector<1x32xf32>
    %6 = vector.shape_cast %5 : vector<1x32xf32> to vector<32xf32>
    %7 = vector.shape_cast %6 : vector<32xf32> to vector<1x32xf32>
    %8 = vector.broadcast %7 : vector<1x32xf32> to vector<16x32xf32>
    %9 = arith.addf %4, %8 : vector<16x32xf32>
    %cst_8 = arith.constant 0.353553385 : f32
    %10 = vector.broadcast %cst_8 : f32 to vector<16x32xf32>
    %11 = arith.mulf %9, %10 : vector<16x32xf32>
    %c0_9 = arith.constant 0 : index
    %c0_10 = arith.constant 0 : index
    %12 = vector.load %arg5[%c0_9, %c0_10] : memref<32x32xbf16, #tpu.memory_space<vmem>>, vector<32x32xbf16>
    %cst_11 = arith.constant dense<0.000000e+00> : vector<16x32xf32>
    %13 = tpu.matmul %1, %12, %cst_11 {dimension_numbers = #tpu.dot_dimension_numbers<[1], [0], [0], [1], [0, 0, 1, 1], [], []>} : vector<16x32xbf16>, vector<32x32xbf16>, vector<16x32xf32> -> vector<16x32xf32>
    %c0_12 = arith.constant 0 : index
    %c0_13 = arith.constant 0 : index
    %14 = vector.load %arg6[%c0_12, %c0_13] : memref<1x32xf32, #tpu.memory_space<vmem>>, vector<1x32xf32>
    %15 = vector.shape_cast %14 : vector<1x32xf32> to vector<32xf32>
    %16 = vector.shape_cast %15 : vector<32xf32> to vector<1x32xf32>
    %17 = vector.broadcast %16 : vector<1x32xf32> to vector<16x32xf32>
    %18 = arith.addf %13, %17 : vector<16x32xf32>
    %c0_14 = arith.constant 0 : index
    %c0_15 = arith.constant 0 : index
    %19 = vector.load %arg7[%c0_14, %c0_15] : memref<32x32xbf16, #tpu.memory_space<vmem>>, vector<32x32xbf16>
    %cst_16 = arith.constant dense<0.000000e+00> : vector<16x32xf32>
    %20 = tpu.matmul %1, %19, %cst_16 {dimension_numbers = #tpu.dot_dimension_numbers<[1], [0], [0], [1], [0, 0, 1, 1], [], []>} : vector<16x32xbf16>, vector<32x32xbf16>, vector<16x32xf32> -> vector<16x32xf32>
    %c0_17 = arith.constant 0 : index
    %c0_18 = arith.constant 0 : index
    %21 = vector.load %arg8[%c0_17, %c0_18] : memref<1x32xf32, #tpu.memory_space<vmem>>, vector<1x32xf32>
    %22 = vector.shape_cast %21 : vector<1x32xf32> to vector<32xf32>
    %23 = vector.shape_cast %22 : vector<32xf32> to vector<1x32xf32>
    %24 = vector.broadcast %23 : vector<1x32xf32> to vector<16x32xf32>
    %25 = arith.addf %20, %24 : vector<16x32xf32>
    %26 = arith.truncf %11 : vector<16x32xf32> to vector<16x32xbf16>
    %27 = arith.truncf %18 : vector<16x32xf32> to vector<16x32xbf16>
    %28 = arith.truncf %25 : vector<16x32xf32> to vector<16x32xbf16>
    %29 = vector.extract_strided_slice %2 {offsets = [0, 0, 0], sizes = [1, 1, 8], strides = [1, 1, 1]} : vector<2x1x8xf32> to vector<1x1x8xf32>
    %30 = vector.shape_cast %29 : vector<1x1x8xf32> to vector<1x8xf32>
    %31 = vector.extract_strided_slice %26 {offsets = [0, 0], sizes = [8, 8], strides = [1, 1]} : vector<16x32xbf16> to vector<8x8xbf16>
    %32 = vector.extract_strided_slice %27 {offsets = [0, 0], sizes = [8, 8], strides = [1, 1]} : vector<16x32xbf16> to vector<8x8xbf16>
    %33 = vector.extract_strided_slice %28 {offsets = [0, 0], sizes = [8, 8], strides = [1, 1]} : vector<16x32xbf16> to vector<8x8xbf16>
    %cst_19 = arith.constant dense<0.000000e+00> : vector<8x8xf32>
    %34 = tpu.matmul %31, %32, %cst_19 {dimension_numbers = #tpu.dot_dimension_numbers<[1], [1], [0], [0], [0, 0, 1, 0], [], []>} : vector<8x8xbf16>, vector<8x8xbf16>, vector<8x8xf32> -> vector<8x8xf32>
    %35 = vector.broadcast %30 : vector<1x8xf32> to vector<8x8xf32>
    %36 = arith.addf %34, %35 : vector<8x8xf32>
    %cst_20 = arith.constant dense<0xFF800000> : vector<8xf32>
    %37 = vector.multi_reduction <maximumf>, %36, %cst_20 [1] : vector<8x8xf32> to vector<8xf32>
    %38 = vector.shape_cast %37 : vector<8xf32> to vector<8x1xf32>
    %39 = vector.broadcast %38 : vector<8x1xf32> to vector<8x8xf32>
    %40 = arith.subf %36, %39 : vector<8x8xf32>
    %41 = math.exp %40 : vector<8x8xf32>
    %cst_21 = arith.constant dense<0.000000e+00> : vector<8xf32>
    %42 = vector.multi_reduction <add>, %41, %cst_21 [1] : vector<8x8xf32> to vector<8xf32>
    %43 = vector.shape_cast %42 : vector<8xf32> to vector<8x1xf32>
    %44 = tpu.reciprocal %43 {approx = true} : vector<8x1xf32> -> vector<8x1xf32>
    %45 = vector.broadcast %44 : vector<8x1xf32> to vector<8x8xf32>
    %46 = arith.mulf %41, %45 : vector<8x8xf32>
    %47 = arith.truncf %46 : vector<8x8xf32> to vector<8x8xbf16>
    %cst_22 = arith.constant dense<0.000000e+00> : vector<8x8xf32>
    %48 = tpu.matmul %47, %33, %cst_22 {dimension_numbers = #tpu.dot_dimension_numbers<[1], [0], [0], [1], [0, 0, 1, 1], [], []>} : vector<8x8xbf16>, vector<8x8xbf16>, vector<8x8xf32> -> vector<8x8xf32>
    %c0_23 = arith.constant 0 : index
    %c0_24 = arith.constant 0 : index
    %49 = vector.load %arg14[%c0_23, %c0_24] : memref<16x32xf32, #tpu.memory_space<vmem>>, vector<8x8xf32>
    tpu.vector_store %arg14[%c0_23, %c0_24], %48 {strides = array<i32>} : memref<16x32xf32, #tpu.memory_space<vmem>>, vector<8x8xf32>,
    %50 = vector.extract_strided_slice %26 {offsets = [0, 8], sizes = [8, 8], strides = [1, 1]} : vector<16x32xbf16> to vector<8x8xbf16>
    %51 = vector.extract_strided_slice %27 {offsets = [0, 8], sizes = [8, 8], strides = [1, 1]} : vector<16x32xbf16> to vector<8x8xbf16>
    %52 = vector.extract_strided_slice %28 {offsets = [0, 8], sizes = [8, 8], strides = [1, 1]} : vector<16x32xbf16> to vector<8x8xbf16>
    %cst_25 = arith.constant dense<0.000000e+00> : vector<8x8xf32>
    %53 = tpu.matmul %50, %51, %cst_25 {dimension_numbers = #tpu.dot_dimension_numbers<[1], [1], [0], [0], [0, 0, 1, 0], [], []>} : vector<8x8xbf16>, vector<8x8xbf16>, vector<8x8xf32> -> vector<8x8xf32>
    %54 = vector.broadcast %30 : vector<1x8xf32> to vector<8x8xf32>
    %55 = arith.addf %53, %54 : vector<8x8xf32>
    %cst_26 = arith.constant dense<0xFF800000> : vector<8xf32>
    %56 = vector.multi_reduction <maximumf>, %55, %cst_26 [1] : vector<8x8xf32> to vector<8xf32>
    %57 = vector.shape_cast %56 : vector<8xf32> to vector<8x1xf32>
    %58 = vector.broadcast %57 : vector<8x1xf32> to vector<8x8xf32>
    %59 = arith.subf %55, %58 : vector<8x8xf32>
    %60 = math.exp %59 : vector<8x8xf32>
    %cst_27 = arith.constant dense<0.000000e+00> : vector<8xf32>
    %61 = vector.multi_reduction <add>, %60, %cst_27 [1] : vector<8x8xf32> to vector<8xf32>
    %62 = vector.shape_cast %61 : vector<8xf32> to vector<8x1xf32>
    %63 = tpu.reciprocal %62 {approx = true} : vector<8x1xf32> -> vector<8x1xf32>
    %64 = vector.broadcast %63 : vector<8x1xf32> to vector<8x8xf32>
    %65 = arith.mulf %60, %64 : vector<8x8xf32>
    %66 = arith.truncf %65 : vector<8x8xf32> to vector<8x8xbf16>
    %cst_28 = arith.constant dense<0.000000e+00> : vector<8x8xf32>
    %67 = tpu.matmul %66, %52, %cst_28 {dimension_numbers = #tpu.dot_dimension_numbers<[1], [0], [0], [1], [0, 0, 1, 1], [], []>} : vector<8x8xbf16>, vector<8x8xbf16>, vector<8x8xf32> -> vector<8x8xf32>
    %c0_29 = arith.constant 0 : index
    %c8 = arith.constant 8 : index
    %68 = vector.load %arg14[%c0_29, %c8] : memref<16x32xf32, #tpu.memory_space<vmem>>, vector<8x8xf32>
    tpu.vector_store %arg14[%c0_29, %c8], %67 {strides = array<i32>} : memref<16x32xf32, #tpu.memory_space<vmem>>, vector<8x8xf32>,
    %69 = vector.extract_strided_slice %26 {offsets = [0, 16], sizes = [8, 8], strides = [1, 1]} : vector<16x32xbf16> to vector<8x8xbf16>
    %70 = vector.extract_strided_slice %27 {offsets = [0, 16], sizes = [8, 8], strides = [1, 1]} : vector<16x32xbf16> to vector<8x8xbf16>
    %71 = vector.extract_strided_slice %28 {offsets = [0, 16], sizes = [8, 8], strides = [1, 1]} : vector<16x32xbf16> to vector<8x8xbf16>
    %cst_30 = arith.constant dense<0.000000e+00> : vector<8x8xf32>
    %72 = tpu.matmul %69, %70, %cst_30 {dimension_numbers = #tpu.dot_dimension_numbers<[1], [1], [0], [0], [0, 0, 1, 0], [], []>} : vector<8x8xbf16>, vector<8x8xbf16>, vector<8x8xf32> -> vector<8x8xf32>
    %73 = vector.broadcast %30 : vector<1x8xf32> to vector<8x8xf32>
    %74 = arith.addf %72, %73 : vector<8x8xf32>
    %cst_31 = arith.constant dense<0xFF800000> : vector<8xf32>
    %75 = vector.multi_reduction <maximumf>, %74, %cst_31 [1] : vector<8x8xf32> to vector<8xf32>
    %76 = vector.shape_cast %75 : vector<8xf32> to vector<8x1xf32>
    %77 = vector.broadcast %76 : vector<8x1xf32> to vector<8x8xf32>
    %78 = arith.subf %74, %77 : vector<8x8xf32>
    %79 = math.exp %78 : vector<8x8xf32>
    %cst_32 = arith.constant dense<0.000000e+00> : vector<8xf32>
    %80 = vector.multi_reduction <add>, %79, %cst_32 [1] : vector<8x8xf32> to vector<8xf32>
    %81 = vector.shape_cast %80 : vector<8xf32> to vector<8x1xf32>
    %82 = tpu.reciprocal %81 {approx = true} : vector<8x1xf32> -> vector<8x1xf32>
    %83 = vector.broadcast %82 : vector<8x1xf32> to vector<8x8xf32>
    %84 = arith.mulf %79, %83 : vector<8x8xf32>
    %85 = arith.truncf %84 : vector<8x8xf32> to vector<8x8xbf16>
    %cst_33 = arith.constant dense<0.000000e+00> : vector<8x8xf32>
    %86 = tpu.matmul %85, %71, %cst_33 {dimension_numbers = #tpu.dot_dimension_numbers<[1], [0], [0], [1], [0, 0, 1, 1], [], []>} : vector<8x8xbf16>, vector<8x8xbf16>, vector<8x8xf32> -> vector<8x8xf32>
    %c0_34 = arith.constant 0 : index
    %c16 = arith.constant 16 : index
    %87 = vector.load %arg14[%c0_34, %c16] : memref<16x32xf32, #tpu.memory_space<vmem>>, vector<8x8xf32>
    tpu.vector_store %arg14[%c0_34, %c16], %86 {strides = array<i32>} : memref<16x32xf32, #tpu.memory_space<vmem>>, vector<8x8xf32>,
    %88 = vector.extract_strided_slice %26 {offsets = [0, 24], sizes = [8, 8], strides = [1, 1]} : vector<16x32xbf16> to vector<8x8xbf16>
    %89 = vector.extract_strided_slice %27 {offsets = [0, 24], sizes = [8, 8], strides = [1, 1]} : vector<16x32xbf16> to vector<8x8xbf16>
    %90 = vector.extract_strided_slice %28 {offsets = [0, 24], sizes = [8, 8], strides = [1, 1]} : vector<16x32xbf16> to vector<8x8xbf16>
    %cst_35 = arith.constant dense<0.000000e+00> : vector<8x8xf32>
    %91 = tpu.matmul %88, %89, %cst_35 {dimension_numbers = #tpu.dot_dimension_numbers<[1], [1], [0], [0], [0, 0, 1, 0], [], []>} : vector<8x8xbf16>, vector<8x8xbf16>, vector<8x8xf32> -> vector<8x8xf32>
    %92 = vector.broadcast %30 : vector<1x8xf32> to vector<8x8xf32>
    %93 = arith.addf %91, %92 : vector<8x8xf32>
    %cst_36 = arith.constant dense<0xFF800000> : vector<8xf32>
    %94 = vector.multi_reduction <maximumf>, %93, %cst_36 [1] : vector<8x8xf32> to vector<8xf32>
    %95 = vector.shape_cast %94 : vector<8xf32> to vector<8x1xf32>
    %96 = vector.broadcast %95 : vector<8x1xf32> to vector<8x8xf32>
    %97 = arith.subf %93, %96 : vector<8x8xf32>
    %98 = math.exp %97 : vector<8x8xf32>
    %cst_37 = arith.constant dense<0.000000e+00> : vector<8xf32>
    %99 = vector.multi_reduction <add>, %98, %cst_37 [1] : vector<8x8xf32> to vector<8xf32>
    %100 = vector.shape_cast %99 : vector<8xf32> to vector<8x1xf32>
    %101 = tpu.reciprocal %100 {approx = true} : vector<8x1xf32> -> vector<8x1xf32>
    %102 = vector.broadcast %101 : vector<8x1xf32> to vector<8x8xf32>
    %103 = arith.mulf %98, %102 : vector<8x8xf32>
    %104 = arith.truncf %103 : vector<8x8xf32> to vector<8x8xbf16>
    %cst_38 = arith.constant dense<0.000000e+00> : vector<8x8xf32>
    %105 = tpu.matmul %104, %90, %cst_38 {dimension_numbers = #tpu.dot_dimension_numbers<[1], [0], [0], [1], [0, 0, 1, 1], [], []>} : vector<8x8xbf16>, vector<8x8xbf16>, vector<8x8xf32> -> vector<8x8xf32>
    %c0_39 = arith.constant 0 : index
    %c24 = arith.constant 24 : index
    %106 = vector.load %arg14[%c0_39, %c24] : memref<16x32xf32, #tpu.memory_space<vmem>>, vector<8x8xf32>
    tpu.vector_store %arg14[%c0_39, %c24], %105 {strides = array<i32>} : memref<16x32xf32, #tpu.memory_space<vmem>>, vector<8x8xf32>,
    %107 = vector.extract_strided_slice %2 {offsets = [1, 0, 0], sizes = [1, 1, 8], strides = [1, 1, 1]} : vector<2x1x8xf32> to vector<1x1x8xf32>
    %108 = vector.shape_cast %107 : vector<1x1x8xf32> to vector<1x8xf32>
    %109 = vector.extract_strided_slice %26 {offsets = [8, 0], sizes = [8, 8], strides = [1, 1]} : vector<16x32xbf16> to vector<8x8xbf16>
    %110 = vector.extract_strided_slice %27 {offsets = [8, 0], sizes = [8, 8], strides = [1, 1]} : vector<16x32xbf16> to vector<8x8xbf16>
    %111 = vector.extract_strided_slice %28 {offsets = [8, 0], sizes = [8, 8], strides = [1, 1]} : vector<16x32xbf16> to vector<8x8xbf16>
    %cst_40 = arith.constant dense<0.000000e+00> : vector<8x8xf32>
    %112 = tpu.matmul %109, %110, %cst_40 {dimension_numbers = #tpu.dot_dimension_numbers<[1], [1], [0], [0], [0, 0, 1, 0], [], []>} : vector<8x8xbf16>, vector<8x8xbf16>, vector<8x8xf32> -> vector<8x8xf32>
    %113 = vector.broadcast %108 : vector<1x8xf32> to vector<8x8xf32>
    %114 = arith.addf %112, %113 : vector<8x8xf32>
    %cst_41 = arith.constant dense<0xFF800000> : vector<8xf32>
    %115 = vector.multi_reduction <maximumf>, %114, %cst_41 [1] : vector<8x8xf32> to vector<8xf32>
    %116 = vector.shape_cast %115 : vector<8xf32> to vector<8x1xf32>
    %117 = vector.broadcast %116 : vector<8x1xf32> to vector<8x8xf32>
    %118 = arith.subf %114, %117 : vector<8x8xf32>
    %119 = math.exp %118 : vector<8x8xf32>
    %cst_42 = arith.constant dense<0.000000e+00> : vector<8xf32>
    %120 = vector.multi_reduction <add>, %119, %cst_42 [1] : vector<8x8xf32> to vector<8xf32>
    %121 = vector.shape_cast %120 : vector<8xf32> to vector<8x1xf32>
    %122 = tpu.reciprocal %121 {approx = true} : vector<8x1xf32> -> vector<8x1xf32>
    %123 = vector.broadcast %122 : vector<8x1xf32> to vector<8x8xf32>
    %124 = arith.mulf %119, %123 : vector<8x8xf32>
    %125 = arith.truncf %124 : vector<8x8xf32> to vector<8x8xbf16>
    %cst_43 = arith.constant dense<0.000000e+00> : vector<8x8xf32>
    %126 = tpu.matmul %125, %111, %cst_43 {dimension_numbers = #tpu.dot_dimension_numbers<[1], [0], [0], [1], [0, 0, 1, 1], [], []>} : vector<8x8xbf16>, vector<8x8xbf16>, vector<8x8xf32> -> vector<8x8xf32>
    %c8_44 = arith.constant 8 : index
    %c0_45 = arith.constant 0 : index
    %127 = vector.load %arg14[%c8_44, %c0_45] : memref<16x32xf32, #tpu.memory_space<vmem>>, vector<8x8xf32>
    tpu.vector_store %arg14[%c8_44, %c0_45], %126 {strides = array<i32>} : memref<16x32xf32, #tpu.memory_space<vmem>>, vector<8x8xf32>,
    %128 = vector.extract_strided_slice %26 {offsets = [8, 8], sizes = [8, 8], strides = [1, 1]} : vector<16x32xbf16> to vector<8x8xbf16>
    %129 = vector.extract_strided_slice %27 {offsets = [8, 8], sizes = [8, 8], strides = [1, 1]} : vector<16x32xbf16> to vector<8x8xbf16>
    %130 = vector.extract_strided_slice %28 {offsets = [8, 8], sizes = [8, 8], strides = [1, 1]} : vector<16x32xbf16> to vector<8x8xbf16>
    %cst_46 = arith.constant dense<0.000000e+00> : vector<8x8xf32>
    %131 = tpu.matmul %128, %129, %cst_46 {dimension_numbers = #tpu.dot_dimension_numbers<[1], [1], [0], [0], [0, 0, 1, 0], [], []>} : vector<8x8xbf16>, vector<8x8xbf16>, vector<8x8xf32> -> vector<8x8xf32>
    %132 = vector.broadcast %108 : vector<1x8xf32> to vector<8x8xf32>
    %133 = arith.addf %131, %132 : vector<8x8xf32>
    %cst_47 = arith.constant dense<0xFF800000> : vector<8xf32>
    %134 = vector.multi_reduction <maximumf>, %133, %cst_47 [1] : vector<8x8xf32> to vector<8xf32>
    %135 = vector.shape_cast %134 : vector<8xf32> to vector<8x1xf32>
    %136 = vector.broadcast %135 : vector<8x1xf32> to vector<8x8xf32>
    %137 = arith.subf %133, %136 : vector<8x8xf32>
    %138 = math.exp %137 : vector<8x8xf32>
    %cst_48 = arith.constant dense<0.000000e+00> : vector<8xf32>
    %139 = vector.multi_reduction <add>, %138, %cst_48 [1] : vector<8x8xf32> to vector<8xf32>
    %140 = vector.shape_cast %139 : vector<8xf32> to vector<8x1xf32>
    %141 = tpu.reciprocal %140 {approx = true} : vector<8x1xf32> -> vector<8x1xf32>
    %142 = vector.broadcast %141 : vector<8x1xf32> to vector<8x8xf32>
    %143 = arith.mulf %138, %142 : vector<8x8xf32>
    %144 = arith.truncf %143 : vector<8x8xf32> to vector<8x8xbf16>
    %cst_49 = arith.constant dense<0.000000e+00> : vector<8x8xf32>
    %145 = tpu.matmul %144, %130, %cst_49 {dimension_numbers = #tpu.dot_dimension_numbers<[1], [0], [0], [1], [0, 0, 1, 1], [], []>} : vector<8x8xbf16>, vector<8x8xbf16>, vector<8x8xf32> -> vector<8x8xf32>
    %c8_50 = arith.constant 8 : index
    %c8_51 = arith.constant 8 : index
    %146 = vector.load %arg14[%c8_50, %c8_51] : memref<16x32xf32, #tpu.memory_space<vmem>>, vector<8x8xf32>
    tpu.vector_store %arg14[%c8_50, %c8_51], %145 {strides = array<i32>} : memref<16x32xf32, #tpu.memory_space<vmem>>, vector<8x8xf32>,
    %147 = vector.extract_strided_slice %26 {offsets = [8, 16], sizes = [8, 8], strides = [1, 1]} : vector<16x32xbf16> to vector<8x8xbf16>
    %148 = vector.extract_strided_slice %27 {offsets = [8, 16], sizes = [8, 8], strides = [1, 1]} : vector<16x32xbf16> to vector<8x8xbf16>
    %149 = vector.extract_strided_slice %28 {offsets = [8, 16], sizes = [8, 8], strides = [1, 1]} : vector<16x32xbf16> to vector<8x8xbf16>
    %cst_52 = arith.constant dense<0.000000e+00> : vector<8x8xf32>
    %150 = tpu.matmul %147, %148, %cst_52 {dimension_numbers = #tpu.dot_dimension_numbers<[1], [1], [0], [0], [0, 0, 1, 0], [], []>} : vector<8x8xbf16>, vector<8x8xbf16>, vector<8x8xf32> -> vector<8x8xf32>
    %151 = vector.broadcast %108 : vector<1x8xf32> to vector<8x8xf32>
    %152 = arith.addf %150, %151 : vector<8x8xf32>
    %cst_53 = arith.constant dense<0xFF800000> : vector<8xf32>
    %153 = vector.multi_reduction <maximumf>, %152, %cst_53 [1] : vector<8x8xf32> to vector<8xf32>
    %154 = vector.shape_cast %153 : vector<8xf32> to vector<8x1xf32>
    %155 = vector.broadcast %154 : vector<8x1xf32> to vector<8x8xf32>
    %156 = arith.subf %152, %155 : vector<8x8xf32>
    %157 = math.exp %156 : vector<8x8xf32>
    %cst_54 = arith.constant dense<0.000000e+00> : vector<8xf32>
    %158 = vector.multi_reduction <add>, %157, %cst_54 [1] : vector<8x8xf32> to vector<8xf32>
    %159 = vector.shape_cast %158 : vector<8xf32> to vector<8x1xf32>
    %160 = tpu.reciprocal %159 {approx = true} : vector<8x1xf32> -> vector<8x1xf32>
    %161 = vector.broadcast %160 : vector<8x1xf32> to vector<8x8xf32>
    %162 = arith.mulf %157, %161 : vector<8x8xf32>
    %163 = arith.truncf %162 : vector<8x8xf32> to vector<8x8xbf16>
    %cst_55 = arith.constant dense<0.000000e+00> : vector<8x8xf32>
    %164 = tpu.matmul %163, %149, %cst_55 {dimension_numbers = #tpu.dot_dimension_numbers<[1], [0], [0], [1], [0, 0, 1, 1], [], []>} : vector<8x8xbf16>, vector<8x8xbf16>, vector<8x8xf32> -> vector<8x8xf32>
    %c8_56 = arith.constant 8 : index
    %c16_57 = arith.constant 16 : index
    %165 = vector.load %arg14[%c8_56, %c16_57] : memref<16x32xf32, #tpu.memory_space<vmem>>, vector<8x8xf32>
    tpu.vector_store %arg14[%c8_56, %c16_57], %164 {strides = array<i32>} : memref<16x32xf32, #tpu.memory_space<vmem>>, vector<8x8xf32>,
    %166 = vector.extract_strided_slice %26 {offsets = [8, 24], sizes = [8, 8], strides = [1, 1]} : vector<16x32xbf16> to vector<8x8xbf16>
    %167 = vector.extract_strided_slice %27 {offsets = [8, 24], sizes = [8, 8], strides = [1, 1]} : vector<16x32xbf16> to vector<8x8xbf16>
    %168 = vector.extract_strided_slice %28 {offsets = [8, 24], sizes = [8, 8], strides = [1, 1]} : vector<16x32xbf16> to vector<8x8xbf16>
    %cst_58 = arith.constant dense<0.000000e+00> : vector<8x8xf32>
    %169 = tpu.matmul %166, %167, %cst_58 {dimension_numbers = #tpu.dot_dimension_numbers<[1], [1], [0], [0], [0, 0, 1, 0], [], []>} : vector<8x8xbf16>, vector<8x8xbf16>, vector<8x8xf32> -> vector<8x8xf32>
    %170 = vector.broadcast %108 : vector<1x8xf32> to vector<8x8xf32>
    %171 = arith.addf %169, %170 : vector<8x8xf32>
    %cst_59 = arith.constant dense<0xFF800000> : vector<8xf32>
    %172 = vector.multi_reduction <maximumf>, %171, %cst_59 [1] : vector<8x8xf32> to vector<8xf32>
    %173 = vector.shape_cast %172 : vector<8xf32> to vector<8x1xf32>
    %174 = vector.broadcast %173 : vector<8x1xf32> to vector<8x8xf32>
    %175 = arith.subf %171, %174 : vector<8x8xf32>
    %176 = math.exp %175 : vector<8x8xf32>
    %cst_60 = arith.constant dense<0.000000e+00> : vector<8xf32>
    %177 = vector.multi_reduction <add>, %176, %cst_60 [1] : vector<8x8xf32> to vector<8xf32>
    %178 = vector.shape_cast %177 : vector<8xf32> to vector<8x1xf32>
    %179 = tpu.reciprocal %178 {approx = true} : vector<8x1xf32> -> vector<8x1xf32>
    %180 = vector.broadcast %179 : vector<8x1xf32> to vector<8x8xf32>
    %181 = arith.mulf %176, %180 : vector<8x8xf32>
    %182 = arith.truncf %181 : vector<8x8xf32> to vector<8x8xbf16>
    %cst_61 = arith.constant dense<0.000000e+00> : vector<8x8xf32>
    %183 = tpu.matmul %182, %168, %cst_61 {dimension_numbers = #tpu.dot_dimension_numbers<[1], [0], [0], [1], [0, 0, 1, 1], [], []>} : vector<8x8xbf16>, vector<8x8xbf16>, vector<8x8xf32> -> vector<8x8xf32>
    %c8_62 = arith.constant 8 : index
    %c24_63 = arith.constant 24 : index
    %184 = vector.load %arg14[%c8_62, %c24_63] : memref<16x32xf32, #tpu.memory_space<vmem>>, vector<8x8xf32>
    tpu.vector_store %arg14[%c8_62, %c24_63], %183 {strides = array<i32>} : memref<16x32xf32, #tpu.memory_space<vmem>>, vector<8x8xf32>,
    %c0_64 = arith.constant 0 : index
    %c0_65 = arith.constant 0 : index
    %185 = vector.load %arg14[%c0_64, %c0_65] : memref<16x32xf32, #tpu.memory_space<vmem>>, vector<16x32xf32>
    %186 = arith.truncf %185 : vector<16x32xf32> to vector<16x32xbf16>
    %c0_66 = arith.constant 0 : index
    %c0_67 = arith.constant 0 : index
    %187 = vector.load %arg9[%c0_66, %c0_67] : memref<32x32xbf16, #tpu.memory_space<vmem>>, vector<32x32xbf16>
    %cst_68 = arith.constant dense<0.000000e+00> : vector<16x32xf32>
    %188 = tpu.matmul %186, %187, %cst_68 {dimension_numbers = #tpu.dot_dimension_numbers<[1], [0], [0], [1], [0, 0, 1, 1], [], []>} : vector<16x32xbf16>, vector<32x32xbf16>, vector<16x32xf32> -> vector<16x32xf32>
    %c0_69 = arith.constant 0 : index
    %c0_70 = arith.constant 0 : index
    %189 = vector.load %arg10[%c0_69, %c0_70] : memref<1x32xf32, #tpu.memory_space<vmem>>, vector<1x32xf32>
    %190 = vector.shape_cast %189 : vector<1x32xf32> to vector<32xf32>
    %191 = vector.shape_cast %190 : vector<32xf32> to vector<1x32xf32>
    %192 = vector.broadcast %191 : vector<1x32xf32> to vector<16x32xf32>
    %193 = arith.addf %188, %192 : vector<16x32xf32>
    %194 = arith.addf %193, %0 : vector<16x32xf32>
    %cst_71 = arith.constant dense<0.000000e+00> : vector<16xf32>
    %195 = vector.multi_reduction <add>, %194, %cst_71 [1] : vector<16x32xf32> to vector<16xf32>
    %196 = vector.shape_cast %195 : vector<16xf32> to vector<16x1xf32>
    %cst_72 = arith.constant 3.200000e+01 : f32
    %197 = vector.broadcast %cst_72 : f32 to vector<16x1xf32>
    %198 = arith.divf %196, %197 : vector<16x1xf32>
    %199 = vector.broadcast %198 : vector<16x1xf32> to vector<16x32xf32>
    %200 = arith.subf %194, %199 : vector<16x32xf32>
    %201 = arith.mulf %200, %200 : vector<16x32xf32>
    %cst_73 = arith.constant dense<0.000000e+00> : vector<16xf32>
    %202 = vector.multi_reduction <add>, %201, %cst_73 [1] : vector<16x32xf32> to vector<16xf32>
    %203 = vector.shape_cast %202 : vector<16xf32> to vector<16x1xf32>
    %cst_74 = arith.constant 3.200000e+01 : f32
    %204 = vector.broadcast %cst_74 : f32 to vector<16x1xf32>
    %205 = arith.divf %203, %204 : vector<16x1xf32>
    %206 = vector.broadcast %198 : vector<16x1xf32> to vector<16x32xf32>
    %207 = arith.subf %194, %206 : vector<16x32xf32>
    %cst_75 = arith.constant 9.99999996E-13 : f32
    %208 = vector.broadcast %cst_75 : f32 to vector<16x1xf32>
    %209 = arith.addf %205, %208 : vector<16x1xf32>
    %210 = math.rsqrt %209 : vector<16x1xf32>
    %211 = vector.broadcast %210 : vector<16x1xf32> to vector<16x32xf32>
    %212 = arith.mulf %207, %211 : vector<16x32xf32>
    %c0_76 = arith.constant 0 : index
    %c0_77 = arith.constant 0 : index
    %213 = vector.load %arg11[%c0_76, %c0_77] : memref<1x32xf32, #tpu.memory_space<vmem>>, vector<1x32xf32>
    %214 = vector.shape_cast %213 : vector<1x32xf32> to vector<32xf32>
    %215 = vector.shape_cast %214 : vector<32xf32> to vector<1x32xf32>
    %216 = vector.broadcast %215 : vector<1x32xf32> to vector<16x32xf32>
    %217 = arith.mulf %212, %216 : vector<16x32xf32>
    %c0_78 = arith.constant 0 : index
    %c0_79 = arith.constant 0 : index
    %218 = vector.load %arg12[%c0_78, %c0_79] : memref<1x32xf32, #tpu.memory_space<vmem>>, vector<1x32xf32>
    %219 = vector.shape_cast %218 : vector<1x32xf32> to vector<32xf32>
    %220 = vector.shape_cast %219 : vector<32xf32> to vector<1x32xf32>
    %221 = vector.broadcast %220 : vector<1x32xf32> to vector<16x32xf32>
    %222 = arith.addf %217, %221 : vector<16x32xf32>
    %c0_80 = arith.constant 0 : index
    %c0_81 = arith.constant 0 : index
    %223 = vector.load %arg13[%c0_80, %c0_81] : memref<16x32xf32, #tpu.memory_space<vmem>>, vector<16x32xf32>
    tpu.vector_store %arg13[%c0_80, %c0_81], %222 {strides = array<i32>} : memref<16x32xf32, #tpu.memory_space<vmem>>, vector<16x32xf32>,
    return
  }
  func.func @transform_0(%arg0: i32) -> (i32, i32) {
    %c0_i32 = arith.constant 0 : i32
    %c0_i32_0 = arith.constant 0 : i32
    return %arg0, %c0_i32 : i32, i32
  }
  func.func @transform_1(%arg0: i32) -> (i32, i32, i32) {
    %c0_i32 = arith.constant 0 : i32
    %c0_i32_0 = arith.constant 0 : i32
    %c0_i32_1 = arith.constant 0 : i32
    return %arg0, %c0_i32, %c0_i32_0 : i32, i32, i32
  }
  func.func @transform_2(%arg0: i32) -> (i32, i32) {
    %c0_i32 = arith.constant 0 : i32
    %c0_i32_0 = arith.constant 0 : i32
    %c0_i32_1 = arith.constant 0 : i32
    return %c0_i32, %c0_i32_0 : i32, i32
  }
  func.func @transform_3(%arg0: i32) -> (i32, i32) {
    %c0_i32 = arith.constant 0 : i32
    %c0_i32_0 = arith.constant 0 : i32
    %c0_i32_1 = arith.constant 0 : i32
    return %c0_i32, %c0_i32_0 : i32, i32
  }
  func.func @transform_4(%arg0: i32) -> (i32, i32) {
    %c0_i32 = arith.constant 0 : i32
    %c0_i32_0 = arith.constant 0 : i32
    %c0_i32_1 = arith.constant 0 : i32
    return %c0_i32, %c0_i32_0 : i32, i32
  }
  func.func @transform_5(%arg0: i32) -> (i32, i32) {
    %c0_i32 = arith.constant 0 : i32
    %c0_i32_0 = arith.constant 0 : i32
    %c0_i32_1 = arith.constant 0 : i32
    return %c0_i32, %c0_i32_0 : i32, i32
  }
  func.func @transform_6(%arg0: i32) -> (i32, i32) {
    %c0_i32 = arith.constant 0 : i32
    %c0_i32_0 = arith.constant 0 : i32
    %c0_i32_1 = arith.constant 0 : i32
    return %c0_i32, %c0_i32_0 : i32, i32
  }
  func.func @transform_7(%arg0: i32) -> (i32, i32) {
    %c0_i32 = arith.constant 0 : i32
    %c0_i32_0 = arith.constant 0 : i32
    %c0_i32_1 = arith.constant 0 : i32
    return %c0_i32, %c0_i32_0 : i32, i32
  }
  func.func @transform_8(%arg0: i32) -> (i32, i32) {
    %c0_i32 = arith.constant 0 : i32
    %c0_i32_0 = arith.constant 0 : i32
    %c0_i32_1 = arith.constant 0 : i32
    return %c0_i32, %c0_i32_0 : i32, i32
  }
  func.func @transform_9(%arg0: i32) -> (i32, i32) {
    %c0_i32 = arith.constant 0 : i32
    %c0_i32_0 = arith.constant 0 : i32
    %c0_i32_1 = arith.constant 0 : i32
    return %c0_i32, %c0_i32_0 : i32, i32
  }
  func.func @transform_10(%arg0: i32) -> (i32, i32) {
    %c0_i32 = arith.constant 0 : i32
    %c0_i32_0 = arith.constant 0 : i32
    %c0_i32_1 = arith.constant 0 : i32
    return %c0_i32, %c0_i32_0 : i32, i32
  }
  func.func @transform_11(%arg0: i32) -> (i32, i32) {
    %c0_i32 = arith.constant 0 : i32
    %c0_i32_0 = arith.constant 0 : i32
    %c0_i32_1 = arith.constant 0 : i32
    return %c0_i32, %c0_i32_0 : i32, i32
  }
  func.func @transform_12(%arg0: i32) -> (i32, i32) {
    %c0_i32 = arith.constant 0 : i32
    %c0_i32_0 = arith.constant 0 : i32
    return %arg0, %c0_i32 : i32, i32
  }
}

</mosaic_0001>

<bundles_post_ra>
// kernel: tpu_custom_call.1
= control target key start
LH: loop header
LB: loop body
LE: loop exit
PB: predicated region body
PF: predicated region fallthrough
CT: control target
= control target key end

     0   :  { %17 = vsyncpa [#allocation4], 0  ;;  %s1429_s0 = inlined_call_operand.hbm [shape: f32[16,32], index: 0, kind: input, shape index: {}]   ;;  %s1430_s1 = inlined_call_operand.hbm [shape: f32[2,1,8], index: 1, kind: input, shape index: {}]   ;;  %s1431_s2 = inlined_call_operand.hbm [shape: bf16[32,32], index: 2, kind: input, shape index: {}]   ;;  %s1432_s3 = inlined_call_operand.vmem [shape: f32[1,32], index: 3, kind: input, shape index: {}]   ;;  %s1433_s4 = inlined_call_operand.hbm [shape: bf16[32,32], index: 4, kind: input, shape index: {}]   ;;  %s1434_s5 = inlined_call_operand.vmem [shape: f32[1,32], index: 5, kind: input, shape index: {}]   ;;  %s1435_s6 = inlined_call_operand.hbm [shape: bf16[32,32], index: 6, kind: input, shape index: {}]   ;;  %s1436_s7 = inlined_call_operand.vmem [shape: f32[1,32], index: 7, kind: input, shape index: {}]   ;;  %s1437_s8 = inlined_call_operand.hbm [shape: bf16[32,32], index: 8, kind: input, shape index: {}]   ;;  %s1438_s9 = inlined_call_operand.vmem [shape: f32[1,32], index: 9, kind: input, shape index: {}]   ;;  %s1439_s10 = inlined_call_operand.vmem [shape: f32[1,32], index: 10, kind: input, shape index: {}]   ;;  %s1440_s11 = inlined_call_operand.vmem [shape: f32[1,32], index: 11, kind: input, shape index: {}]   ;;  %s1441_s12 = inlined_call_operand.hbm [shape: f32[16,32], index: 12, kind: output, shape index: {}]  }
   0x1   :  { %18 = vsyncpa [#allocation7], 0 }
   0x2   :  { %19 = vsyncpa [#allocation10], 0 }
   0x3   :  { %20 = vsyncpa [#allocation13], 0  ;;  %s39_s23 = sshll.u32 %s1430_s1, 4  ;;  %s40_s23 = int_to_ptr.hbm [resolvable:$true] %s39_s23 }
   0x4   :  { %21 = vsyncpa [#allocation5], 0  ;;  %s1184_s24 = smov [#allocation6]   ;;  %s1185_s26 = smov 16  }
   0x5   :  { %s41_s25 = sshll.u32 %s1184_s24, 4  ;;  %s1186_s27 = smov 1   ;;  %s42_s25 = int_to_ptr.vmem [resolvable:$true] %s41_s25 }
   0x6   :  { %47 = dma.hbm_to_vmem [thread:$0]  %s40_s23, 32, %s42_s25, [#allocation7], %s1185_s26, %s1185_s26, %s1186_s27  }
   0x7   :  { %s67_s30 = sshll.u32 %s1433_s4, 4  ;;  %s1187_s13 = smov [#allocation9]   ;;  %s68_s30 = int_to_ptr.hbm [resolvable:$true] %s67_s30 }
   0x8   :  { %s69_s14 = sshll.u32 %s1187_s13, 4  ;;  %s26_s1 = sshll.u32 %s1429_s0, 4  ;;  %s70_s14 = int_to_ptr.vmem [resolvable:$true] %s69_s14  ;;  %s27_s1 = int_to_ptr.hbm [resolvable:$true] %s26_s1 }
   0x9   :  { %s1188_s17 = smov 64   ;;  %s1189_s18 = smov 4  }
   0xa   :  { %75 = dma.hbm_to_vmem [thread:$0]  %s68_s30, 256, %s70_s14, [#allocation10], %s1188_s17, %s1188_s17, %s1189_s18  }
   0xb   :  { %s1190_s19 = smov [#allocation3]   ;;  %s52_s23 = sshll.u32 %s1431_s2, 4  ;;  %s53_s23 = int_to_ptr.hbm [resolvable:$true] %s52_s23 }
   0xc   :  { %s28_s20 = sshll.u32 %s1190_s19, 4  ;;  %s1191_s4 = smov 128   ;;  %s29_s20 = int_to_ptr.vmem [resolvable:$true] %s28_s20 }
   0xd   :  { %s1192_s24 = smov 8   ;;  %s1193_s0 = smov [#allocation8]  }
   0xe   :  { %34 = dma.hbm_to_vmem [thread:$0]  %s27_s1, 256, %s29_s20, [#allocation4], %s1191_s4, %s1191_s4, %s1192_s24  }
   0xf   :  { %s54_s25 = sshll.u32 %s1193_s0, 4  ;;  %s82_s29 = sshll.u32 %s1435_s6, 4  ;;  %s55_s25 = int_to_ptr.vmem [resolvable:$true] %s54_s25  ;;  %s83_s29 = int_to_ptr.hbm [resolvable:$true] %s82_s29 }
  0x10   :  { %60 = dma.hbm_to_vmem [thread:$0]  %s53_s23, 256, %s55_s25, [#allocation7], %s1188_s17, %s1188_s17, %s1189_s18  }
  0x11   :  { %s97_s2 = sshll.u32 %s1437_s8, 4  ;;  %s1194_s14 = smov [#allocation11]   ;;  %s98_s2 = int_to_ptr.hbm [resolvable:$true] %s97_s2 }
  0x12   :  { %s84_s15 = sshll.u32 %s1194_s14, 4  ;;  %s1195_s16 = smov [#allocation12]   ;;  %s85_s15 = int_to_ptr.vmem [resolvable:$true] %s84_s15 }
  0x13   :  { %90 = dma.hbm_to_vmem [thread:$0]  %s83_s29, 256, %s85_s15, [#allocation10], %s1188_s17, %s1188_s17, %s1189_s18  }
  0x14   :  { %s99_s1 = sshll.u32 %s1195_s16, 4  ;;  %s100_s1 = int_to_ptr.vmem [resolvable:$true] %s99_s1 }
  0x15   :  { %105 = dma.hbm_to_vmem [thread:$0]  %s98_s2, 256, %s100_s1, [#allocation13], %s1188_s17, %s1188_s17, %s1189_s18  }
  0x16   :  { %1174 = dma.done.wait [#allocation4], 256  }
  0x17   :  { %1175 = vsyncadd [#allocation4], 4294967040 }
  0x18   :  { %1176 = dma.done.wait [#allocation7], 288  }
  0x19   :  { %1177 = vsyncadd [#allocation7], 4294967008 }
  0x1a   :  { %1178 = dma.done.wait [#allocation10], 512  }
  0x1b   :  { %1179 = vsyncadd [#allocation10], 4294966784 }
  0x1c   :  { %1180 = dma.done.wait [#allocation13], 256  }
  0x1d   :  { %1181 = vsyncadd [#allocation13], 4294967040  ;;  %v935_v0 = vld [vmem:[#allocation8 + $0x8] sm:$0xff]  ;;  %v937_v1 = vld [vmem:[#allocation9 + $0x8] sm:$0xff]  ;;  %vm162_vm0 = vcmask 261120   ;;  %vm259_vm1 = vcmask 64512  }
  0x1e   :  { %v934_v2 = vld [vmem:[#allocation8] sm:$0xff]  ;;  %v936_v3 = vld [vmem:[#allocation9] sm:$0xff]  ;;  %172 = vmatpush.bf16.msra.mxu0 %v935_v0  ;;  %208 = vmatpush.bf16.msra.mxu1 %v937_v1  ;;  %v960_v7 = vld [vmem:[%s1432_s3] ss:$0 sm:$0xff]  ;;  %s1196_s3 = smov 112   ;;  %s1198_s19 = smov 104  }
  0x1f   :  { %v1290_v4 = vld [vmem:[#allocation3] sm:$0xff]  ;;  %v1292_v5 = vld [vmem:[#allocation3 + $0x8] sm:$0xff]  ;;  %v961_v8 = vld [vmem:[%s1434_s5] ss:$0 sm:$0xff]  ;;  %s1197_s5 = smov 120   ;;  %vm294_vm2 = vcmask 1043456  }
  0x20   :  { %v1296_v6 = vpack.c.bf16 %v1292_v5, %v1290_v4  ;;  %v939_v34 = vld [vmem:[#allocation11 + $0x8] sm:$0xff]  ;;  %v938_v39 = vld [vmem:[#allocation11] sm:$0xff]  ;;  %v962_v48 = vld [vmem:[#allocation6] ss:$0 sm:$0xff]  ;;  %vm381_vm3 = vcmask 130112   ;;  %vm443_vm4 = vcmask 195712  }
  0x21   :  { %242 = vmatpush.bf16.msra.mxu2 %v939_v34  ;;  %vm505_vm5 = vcmask 261312   ;;  %s866_s30 = sshll.u32 %s1441_s12, 4  ;;  %s867_s30 = int_to_ptr.hbm [resolvable:$true] %s866_s30 }
  0x22   :  { %173 = vmatpush.bf16.msra.mxu0 %v934_v2  ;;  %209 = vmatpush.bf16.msra.mxu1 %v936_v3  ;;  %v1343_v2 = vld [vmem:[%s1436_s7] ss:$0 sm:$0xff]  ;;  %s1199_s7 = smov 24  }
  0x25   :  { %890 = vmatmul.msk.bf16.vlgmr.msra.gmra.mxu0 %vm162_vm0, %v1296_v6  ;;  %899 = vmatmul.msk.bf16.vlgmr.msra.gmra.mxu1 %vm162_vm0, %v1296_v6 }
  0x26   :  { %243 = vmatpush.bf16.msra.mxu2 %v938_v39 }
  0x29   :  { %908 = vmatmul.msk.bf16.vlgmr.msra.gmra.mxu2 %vm162_vm0, %v1296_v6 }
  0xa2   :  { %v175_v9 = vpop.f32.mrf.mxu0  ;;  %v211_v10 = vpop.f32.mrf.mxu1 }
  0xa3   :  { %v176_v11 = vadd.f32 %v960_v7, %v175_v9  ;;  %v212_v12 = vadd.f32 %v961_v8, %v211_v10 }
  0xa5   :  { %v180_v13 = vmul.f32 0.35355338, %v176_v11  ;;  %v252_v14 = vpack.c.bf16 %v212_v12, %v212_v12 }
  0xa7   :  { %v250_v15 = vpack.c.bf16 %v180_v13, %v180_v13  ;;  %v318_v16 = vunpack.c.l.b16 %v252_v14  ;;  %v264_v17 = vsel %vm259_vm1, %v252_v14, 0 }
  0xa8   :  { %273 = vmatpush.bf16.xpose.msra.mxu3 %v264_v17 }
  0xa9   :  { %v313_v18 = vunpack.c.l.b16 %v250_v15  ;;  %v319_v19 = vpack.c.b16 %v318_v16, %v318_v16 }
  0xaa   :  { %v213_v20 = vpop.f32.mrf.mxu1  ;;  %v177_v21 = vpop.f32.mrf.mxu0 }
  0xab   :  { %385 = vrot.lane.b32.xlu1 %v319_v19, %s1196_s3  ;;  %320 = vrot.lane.b32.xlu0 %v319_v19, %s1197_s5  ;;  %v314_v22 = vpack.c.b16 %v313_v18, %v313_v18  ;;  %v178_v23 = vadd.f32 %v960_v7, %v177_v21  ;;  %v214_v24 = vadd.f32 %v961_v8, %v213_v20 }
  0xac   :  { %v245_v6 = vpop.f32.mrf.mxu2 }
  0xad   :  { %383 = vrot.lane.b32.xlu2 %v314_v22, %s1196_s3  ;;  %v181_v25 = vmul.f32 0.35355338, %v178_v23  ;;  %v253_v26 = vpack.c.bf16 %v214_v24, %v214_v24  ;;  %v246_v8 = vadd.f32 %v1343_v2, %v245_v6 }
  0xaf   :  { %909 = vmatmul.msk.bf16.vlgmr.msra.gmra.mxu3 %vm259_vm1, %v250_v15  ;;  %v251_v27 = vpack.c.bf16 %v181_v25, %v181_v25  ;;  %v567_v28 = vunpack.c.l.b16 %v253_v26  ;;  %v514_v40 = vsel %vm259_vm1, %v253_v26, 0  ;;  %v254_v9 = vpack.c.bf16 %v246_v8, %v246_v8  ;;  %v963_v15 = vld [vmem:[#allocation6 + $0x1] ss:$0 sm:$0xff] }
  0xb1   :  { %v562_v29 = vunpack.c.l.b16 %v251_v27  ;;  %v568_v30 = vpack.c.b16 %v567_v28, %v567_v28  ;;  %v296_v12 = vsel %vm294_vm2, %v254_v9, 0 }
  0xb2   :  { %305 = vmatpush.bf16.msrb.mxu0 %v296_v12 }
  0xb3   :  { %447 = vrot.lane.b32.xlu1 %v319_v19, %s1198_s19  ;;  %315 = vrot.lane.b32.xlu0 %v314_v22, %s1197_s5  ;;  %v563_v31 = vpack.c.b16 %v562_v29, %v562_v29 }
  0xb5   :  { %445 = vrot.lane.b32.xlu2 %v314_v22, %s1198_s19 }
  0xbb   :  { %564 = vrot.lane.b32.xlu1 %v563_v31, %s1197_s5  ;;  %569 = vrot.lane.b32.xlu0 %v568_v30, %s1197_s5 }
  0xbd   :  { %633 = vrot.lane.b32.xlu2 %v568_v30, %s1196_s3 }
  0xc3   :  { %631 = vrot.lane.b32.xlu1 %v563_v31, %s1196_s3  ;;  %694 = vrot.lane.b32.xlu0 %v568_v30, %s1198_s19  ;;  %v354_v30 = vunpack.c.l.b16 %v254_v9 }
  0xc5   :  { %692 = vrot.lane.b32.xlu2 %v563_v31, %s1198_s19 }
 0x107   :  { %v384_v32 = vpop.permute.xlu2 %383 }
 0x10f   :  { %v446_v33 = vpop.permute.xlu2 %445 }
 0x117   :  { %v634_v41 = vpop.permute.xlu2 %633 }
 0x118   :  { %v639_v44 = vsel %vm259_vm1, %v634_v41, 0 }
 0x11d   :  { %v386_v35 = vpop.permute.xlu1 %385  ;;  %v321_v36 = vpop.permute.xlu0 %320 }
 0x11e   :  { %v326_v37 = vsel %vm259_vm1, %v321_v36, 0  ;;  %v391_v38 = vsel %vm259_vm1, %v386_v35, 0 }
 0x11f   :  { %335 = vmatpush.bf16.xpose.msrb.mxu1 %v326_v37  ;;  %400 = vmatpush.bf16.xpose.msrb.mxu3 %v391_v38  ;;  %v693_v57 = vpop.permute.xlu2 %692 }
 0x125   :  { %v448_v42 = vpop.permute.xlu1 %447  ;;  %v316_v43 = vpop.permute.xlu0 %315 }
 0x126   :  { %v453_v45 = vsel %vm259_vm1, %v448_v42, 0  ;;  %911 = vmatmul.msk.bf16.vlgmr.msrb.gmra.mxu1 %vm259_vm1, %v316_v43  ;;  %913 = vmatmul.msk.bf16.vlgmr.msrb.gmra.mxu3 %vm259_vm1, %v384_v32  ;;  %v355_v32 = vpack.c.b16 %v354_v30, %v354_v30 }
 0x127   :  { %523 = vmatpush.bf16.xpose.msra.mxu3 %v514_v40  ;;  %462 = vmatpush.bf16.xpose.msra.mxu1 %v453_v45 }
 0x12d   :  { %v570_v46 = vpop.permute.xlu0 %569  ;;  %v565_v55 = vpop.permute.xlu1 %564 }
 0x12e   :  { %v575_v47 = vsel %vm259_vm1, %v570_v46, 0 }
 0x12f   :  { %648 = vmatpush.bf16.xpose.msrb.mxu3 %v639_v44  ;;  %584 = vmatpush.bf16.xpose.msrb.mxu1 %v575_v47 }
 0x132   :  { %v275_v49 = vpop.f32.mrf.mxu3 }
 0x133   :  { %v276_v50 = vadd.f32 %v962_v48, %v275_v49  ;;  %v247_v49 = vpop.f32.mrf.mxu2 }
 0x135   :  { %v695_v51 = vpop.permute.xlu0 %694  ;;  %v279_v52 = vsel %vm259_vm1, %v276_v50, -inf  ;;  %v632_v56 = vpop.permute.xlu1 %631 }
 0x136   :  { %v700_v53 = vsel %vm259_vm1, %v695_v51, 0  ;;  %915 = vmatmul.msk.bf16.vlgmr.msra.gmra.mxu1 %vm259_vm1, %v446_v33  ;;  %917 = vmatmul.msk.bf16.vlgmr.msra.gmra.mxu3 %vm259_vm1, %v251_v27 }
 0x137   :  { %280 = vmax.xlane.f32.xlu1 %v279_v52  ;;  %709 = vmatpush.bf16.xpose.msra.mxu1 %v700_v53 }
 0x13a   :  { %v277_v54 = vpop.f32.mrf.mxu3 }
 0x13b   :  { %v248_v54 = vadd.f32 %v1343_v2, %v247_v49 }
 0x146   :  { %919 = vmatmul.msk.bf16.vlgmr.msrb.gmra.mxu1 %vm259_vm1, %v565_v55  ;;  %921 = vmatmul.msk.bf16.vlgmr.msrb.gmra.mxu3 %vm259_vm1, %v632_v56 }
 0x156   :  { %923 = vmatmul.msk.bf16.vlgmr.msra.gmra.mxu1 %vm259_vm1, %v693_v57 }
 0x1a3   :  { %v337_v58 = vpop.f32.mrf.mxu1 }
 0x1a4   :  { %v338_v59 = vadd.f32 %v962_v48, %v337_v58  ;;  %v255_v58 = vpack.c.bf16 %v248_v54, %v248_v54 }
 0x1a6   :  { %v341_v60 = vsel %vm259_vm1, %v338_v59, -inf  ;;  %v603_v6 = vunpack.c.l.b16 %v255_v58 }
 0x1a7   :  { %342 = vmax.xlane.f32.xlu0 %v341_v60 }
 0x1a9   :  { %v402_v61 = vpop.f32.mrf.mxu3 }
 0x1aa   :  { %v403_v62 = vadd.f32 %v962_v48, %v402_v61  ;;  %v281_v63 = vpop.xlane.xlu1 %280 }
 0x1ab   :  { %v282_v0 = vsub.f32 %v276_v50, %v281_v63  ;;  %v339_v1 = vpop.f32.mrf.mxu1 }
 0x1ac   :  { %v406_v3 = vsel %vm259_vm1, %v403_v62, -inf }
 0x1ad   :  { %v283_v7 = vmul.f32 1.442695, %v282_v0  ;;  %407 = vmax.xlane.f32.xlu2 %v406_v3  ;;  %v545_v0 = vsel %vm294_vm2, %v255_v58, 0 }
 0x1af   :  { %968 = vpow2.f32 %v283_v7 }
 0x1b1   :  { %v404_v10 = vpop.f32.mrf.mxu3 }
 0x1b2   :  { %v604_v10 = vpack.c.b16 %v603_v6, %v603_v6 }
 0x1b3   :  { %v464_v11 = vpop.f32.mrf.mxu1 }
 0x1b4   :  { %v465_v17 = vadd.f32 %v962_v48, %v464_v11 }
 0x1b5   :  { %v969_v13 = vpop.eup %968 }
 0x1b6   :  { %v285_v14 = vsel %vm259_vm1, %v969_v13, 0.0  ;;  %v468_v21 = vsel %vm259_vm1, %v465_v17, -inf }
 0x1b7   :  { %286 = vadd.xlane.f32.xlu2 %v285_v14 }
 0x1b9   :  { %v525_v16 = vpop.f32.mrf.mxu3 }
 0x1ba   :  { %v526_v18 = vadd.f32 %v963_v15, %v525_v16 }
 0x1bb   :  { %v466_v19 = vpop.f32.mrf.mxu1 }
 0x1bc   :  { %v529_v20 = vsel %vm259_vm1, %v526_v18, -inf }
 0x1bd   :  { %530 = vmax.xlane.f32.xlu1 %v529_v20 }
 0x1bf   :  { %469 = vmax.xlane.f32.xlu2 %v468_v21 }
 0x1c1   :  { %v527_v22 = vpop.f32.mrf.mxu3 }
 0x1c3   :  { %v586_v23 = vpop.f32.mrf.mxu1 }
 0x1c4   :  { %v587_v24 = vadd.f32 %v963_v15, %v586_v23 }
 0x1c6   :  { %v590_v25 = vsel %vm259_vm1, %v587_v24, -inf }
 0x1c7   :  { %591 = vmax.xlane.f32.xlu0 %v590_v25 }
 0x1c9   :  { %v650_v26 = vpop.f32.mrf.mxu3 }
 0x1ca   :  { %v1352_v27 = vadd.f32 %v963_v15, %v650_v26 }
 0x1cb   :  { %v588_v28 = vpop.f32.mrf.mxu1 }
 0x1cc   :  { %v654_v29 = vsel %vm259_vm1, %v1352_v27, -inf }
 0x1cd   :  { %655 = vmax.xlane.f32.xlu1 %v654_v29 }
 0x1d1   :  { %v652_v31 = vpop.f32.mrf.mxu3 }
 0x1d3   :  { %v711_v33 = vpop.f32.mrf.mxu1 }
 0x1d4   :  { %v1359_v35 = vadd.f32 %v963_v15, %v711_v33 }
 0x1d6   :  { %v715_v36 = vsel %vm259_vm1, %v1359_v35, -inf }
 0x1d7   :  { %418 = vrot.lane.b32.xlu2 %v355_v32, %s1196_s3 }
 0x1db   :  { %v713_v34 = vpop.f32.mrf.mxu1  ;;  %356 = vrot.lane.b32.xlu0 %v355_v32, %s1197_s5 }
 0x1e6   :  { %480 = vrot.lane.b32.xlu1 %v355_v32, %s1198_s19 }
 0x200   :  { %716 = vmax.xlane.f32.xlu2 %v715_v36 }
 0x21a   :  { %v343_v37 = vpop.xlane.xlu0 %342 }
 0x21b   :  { %v344_v38 = vsub.f32 %v338_v59, %v343_v37 }
 0x21d   :  { %v345_v39 = vmul.f32 1.442695, %v344_v38 }
 0x21f   :  { %970 = vpow2.f32 %v345_v39 }
 0x220   :  { %v408_v40 = vpop.xlane.xlu2 %407 }
 0x221   :  { %v409_v41 = vsub.f32 %v403_v62, %v408_v40 }
 0x223   :  { %v410_v42 = vmul.f32 1.442695, %v409_v41 }
 0x225   :  { %v1363_v43 = vpop.eup %970  ;;  %972 = vpow2.f32 %v410_v42 }
 0x226   :  { %v347_v44 = vsel %vm259_vm1, %v1363_v43, 0.0 }
 0x227   :  { %348 = vadd.xlane.f32.xlu0 %v347_v44 }
 0x22a   :  { %v287_v45 = vpop.xlane.xlu2 %286 }
 0x22b   :  { %v1367_v46 = vpop.eup %972  ;;  %974 = vrcp.f32 %v287_v45 }
 0x22c   :  { %v412_v47 = vsel %vm259_vm1, %v1367_v46, 0.0 }
 0x22d   :  { %413 = vadd.xlane.f32.xlu2 %v412_v47 }
 0x230   :  { %v531_v51 = vpop.xlane.xlu1 %530 }
 0x231   :  { %v975_v48 = vpop.eup %974  ;;  %v532_v56 = vsub.f32 %v526_v18, %v531_v51 }
 0x232   :  { %v289_v50 = vmul.f32 %v975_v48, %v969_v13  ;;  %v470_v52 = vpop.xlane.xlu2 %469 }
 0x233   :  { %v471_v53 = vsub.f32 %v465_v17, %v470_v52  ;;  %v533_v59 = vmul.f32 1.442695, %v532_v56 }
 0x234   :  { %v290_v55 = vpack.c.bf16 %v289_v50, %v289_v50 }
 0x235   :  { %v472_v57 = vmul.f32 1.442695, %v471_v53 }
 0x236   :  { %910 = vmatmul.msk.bf16.vlgmr.msrb.gmra.mxu0 %vm259_vm1, %v290_v55 }
 0x237   :  { %976 = vpow2.f32 %v472_v57 }
 0x238   :  { %978 = vpow2.f32 %v533_v59 }
 0x23a   :  { %v419_v60 = vpop.permute.xlu2 %418  ;;  %v592_v61 = vpop.xlane.xlu0 %591 }
 0x23b   :  { %v424_v62 = vsel %vm294_vm2, %v419_v60, 0  ;;  %v593_v63 = vsub.f32 %v587_v24, %v592_v61 }
 0x23c   :  { %433 = vmatpush.bf16.msra.mxu0 %v424_v62 }
 0x23d   :  { %v977_v1 = vpop.eup %976  ;;  %v594_v3 = vmul.f32 1.442695, %v593_v63 }
 0x23e   :  { %v474_v2 = vsel %vm259_vm1, %v977_v1, 0.0  ;;  %v979_v9 = vpop.eup %978 }
 0x23f   :  { %980 = vpow2.f32 %v594_v3  ;;  %475 = vadd.xlane.f32.xlu1 %v474_v2  ;;  %v535_v13 = vsel %vm259_vm1, %v979_v9, 0.0 }
 0x240   :  { %554 = vmatpush.bf16.msrb.mxu0 %v545_v0  ;;  %v656_v7 = vpop.xlane.xlu1 %655 }
 0x241   :  { %v657_v8 = vsub.f32 %v1352_v27, %v656_v7 }
 0x243   :  { %v658_v11 = vmul.f32 1.442695, %v657_v8 }
 0x245   :  { %v981_v12 = vpop.eup %980  ;;  %982 = vpow2.f32 %v658_v11  ;;  %605 = vrot.lane.b32.xlu2 %v604_v10, %s1197_s5 }
 0x246   :  { %v596_v14 = vsel %vm259_vm1, %v981_v12, 0.0 }
 0x247   :  { %536 = vadd.xlane.f32.xlu1 %v535_v13  ;;  %597 = vadd.xlane.f32.xlu0 %v596_v14 }
 0x24b   :  { %v983_v15 = vpop.eup %982 }
 0x24c   :  { %v660_v17 = vsel %vm259_vm1, %v983_v15, 0.0 }
 0x24d   :  { %v357_v16 = vpop.permute.xlu0 %356 }
 0x24e   :  { %v362_v18 = vsel %vm294_vm2, %v357_v16, 0 }
 0x24f   :  { %661 = vadd.xlane.f32.xlu0 %v660_v17  ;;  %371 = vmatpush.bf16.msrb.mxu2 %v362_v18 }
 0x258   :  { %v481_v19 = vpop.permute.xlu1 %480 }
 0x259   :  { %v486_v20 = vsel %vm294_vm2, %v481_v19, 0  ;;  %v941_v19 = vld [vmem:[#allocation12 + $0x8] sm:$0xff] }
 0x25a   :  { %495 = vmatpush.bf16.msra.mxu2 %v486_v20  ;;  %785 = vmatpush.bf16.msra.mxu3 %v941_v19  ;;  %v940_v20 = vld [vmem:[#allocation12] sm:$0xff] }
 0x25e   :  { %786 = vmatpush.bf16.msra.mxu3 %v940_v20 }
 0x260   :  { %666 = vrot.lane.b32.xlu1 %v604_v10, %s1196_s3 }
 0x263   :  { %727 = vrot.lane.b32.xlu0 %v604_v10, %s1198_s19 }
 0x273   :  { %v717_v21 = vpop.xlane.xlu2 %716 }
 0x274   :  { %v718_v22 = vsub.f32 %v1359_v35, %v717_v21 }
 0x276   :  { %v719_v23 = vmul.f32 1.442695, %v718_v22 }
 0x278   :  { %984 = vpow2.f32 %v719_v23 }
 0x27e   :  { %v985_v24 = vpop.eup %984 }
 0x27f   :  { %v721_v25 = vsel %vm259_vm1, %v985_v24, 0.0 }
 0x280   :  { %722 = vadd.xlane.f32.xlu2 %v721_v25  ;;  %v965_v25 = vld [vmem:[%s1438_s9] ss:$0 sm:$0xff] }
 0x29a   :  { %v349_v26 = vpop.xlane.xlu0 %348 }
 0x29b   :  { %986 = vrcp.f32 %v349_v26 }
 0x2a0   :  { %v414_v27 = vpop.xlane.xlu2 %413 }
 0x2a1   :  { %v987_v28 = vpop.eup %986  ;;  %988 = vrcp.f32 %v414_v27 }
 0x2a2   :  { %v351_v29 = vmul.f32 %v987_v28, %v1363_v43 }
 0x2a4   :  { %v352_v30 = vpack.c.bf16 %v351_v29, %v351_v29 }
 0x2a6   :  { %912 = vmatmul.msk.bf16.vlgmr.msrb.gmra.mxu2 %vm259_vm1, %v352_v30 }
 0x2a7   :  { %v989_v31 = vpop.eup %988 }
 0x2a8   :  { %v416_v32 = vmul.f32 %v989_v31, %v1367_v46  ;;  %v606_v33 = vpop.permute.xlu2 %605 }
 0x2a9   :  { %v611_v34 = vsel %vm294_vm2, %v606_v33, 0 }
 0x2aa   :  { %v417_v35 = vpack.c.bf16 %v416_v32, %v416_v32  ;;  %620 = vmatpush.bf16.msrb.mxu2 %v611_v34  ;;  %v1200_v34 = vmov 32.0  }
 0x2ac   :  { %914 = vmatmul.msk.bf16.vlgmr.msra.gmra.mxu0 %vm259_vm1, %v417_v35 }
 0x2b2   :  { %v476_v36 = vpop.xlane.xlu1 %475 }
 0x2b3   :  { %990 = vrcp.f32 %v476_v36  ;;  %v307_v37 = vpop.f32.mrf.mxu0 }
 0x2b4   :  { %311 = vst.msk [vmem:[#allocation2] sm:$0xff] %vm259_vm1, %v307_v37 }
 0x2b9   :  { %v991_v38 = vpop.eup %990 }
 0x2ba   :  { %v478_v39 = vmul.f32 %v991_v38, %v977_v1  ;;  %v537_v40 = vpop.xlane.xlu1 %536  ;;  %v598_v41 = vpop.xlane.xlu0 %597 }
 0x2bb   :  { %992 = vrcp.f32 %v537_v40  ;;  %v309_v42 = vpop.f32.mrf.mxu0 }
 0x2bc   :  { %v479_v43 = vpack.c.bf16 %v478_v39, %v478_v39  ;;  %994 = vrcp.f32 %v598_v41 }
 0x2be   :  { %916 = vmatmul.msk.bf16.vlgmr.msra.gmra.mxu2 %vm259_vm1, %v479_v43 }
 0x2c1   :  { %v993_v44 = vpop.eup %992 }
 0x2c2   :  { %v539_v45 = vmul.f32 %v993_v44, %v979_v9  ;;  %v995_v47 = vpop.eup %994  ;;  %v662_v48 = vpop.xlane.xlu0 %661 }
 0x2c3   :  { %v600_v49 = vmul.f32 %v995_v47, %v981_v12  ;;  %996 = vrcp.f32 %v662_v48 }
 0x2c4   :  { %v540_v46 = vpack.c.bf16 %v539_v45, %v539_v45 }
 0x2c5   :  { %v601_v50 = vpack.c.bf16 %v600_v49, %v600_v49 }
 0x2c6   :  { %918 = vmatmul.msk.bf16.vlgmr.msrb.gmra.mxu0 %vm259_vm1, %v540_v46 }
 0x2c9   :  { %v997_v51 = vpop.eup %996 }
 0x2ca   :  { %v664_v52 = vmul.f32 %v997_v51, %v983_v15 }
 0x2cc   :  { %v665_v55 = vpack.c.bf16 %v664_v52, %v664_v52 }
 0x2ce   :  { %920 = vmatmul.msk.bf16.vlgmr.msrb.gmra.mxu2 %vm259_vm1, %v601_v50 }
 0x2d2   :  { %v667_v53 = vpop.permute.xlu1 %666 }
 0x2d3   :  { %v672_v54 = vsel %vm294_vm2, %v667_v53, 0 }
 0x2d4   :  { %681 = vmatpush.bf16.msra.mxu0 %v672_v54 }
 0x2d5   :  { %v728_v56 = vpop.permute.xlu0 %727 }
 0x2d6   :  { %v733_v57 = vsel %vm294_vm2, %v728_v56, 0 }
 0x2d7   :  { %922 = vmatmul.msk.bf16.vlgmr.msra.gmra.mxu0 %vm259_vm1, %v665_v55  ;;  %742 = vmatpush.bf16.msra.mxu2 %v733_v57 }
 0x2f3   :  { %v723_v58 = vpop.xlane.xlu2 %722 }
 0x2f4   :  { %998 = vrcp.f32 %v723_v58 }
 0x2f5   :  { %1000 = vrcp.f32 %v1200_v34 }
 0x2fa   :  { %v999_v59 = vpop.eup %998 }
 0x2fb   :  { %v725_v60 = vmul.f32 %v999_v59, %v985_v24  ;;  %v1001_v35 = vpop.eup %1000 }
 0x2fc   :  { %v802_v36 = vmul.f32 32.0, %v1001_v35  ;;  %vm806_vm6 = vweird.f32 %v1001_v35 }
 0x2fd   :  { %v726_v61 = vpack.c.bf16 %v725_v60, %v725_v60 }
 0x2fe   :  { %v803_v37 = vsub.f32 1.0, %v802_v36 }
 0x2ff   :  { %924 = vmatmul.msk.bf16.vlgmr.msra.gmra.mxu2 %vm259_vm1, %v726_v61 }
 0x300   :  { %v804_v38 = vmul.f32 %v1001_v35, %v803_v37 }
 0x302   :  { %v805_v39 = vadd.f32 %v1001_v35, %v804_v38 }
 0x304   :  { %v807_v40 = vsel %vm806_vm6, %v1001_v35, %v805_v39 }
 0x329   :  { %v373_v62 = vpop.f32.mrf.mxu2  ;;  %v435_v63 = vpop.f32.mrf.mxu0 }
 0x32a   :  { %378 = vrot.lane.b32.xlu2 %v373_v62, %s1192_s24  ;;  %440 = vrot.lane.b32.xlu0 %v435_v63, %s1185_s26  ;;  %v966_v63 = vld [vmem:[%s1439_s10] ss:$0 sm:$0xff]  ;;  %s1201_s10 = smov [#allocation14]  }
 0x32b   :  { %s864_s27 = sshll.u32 %s1201_s10, 4  ;;  %s865_s27 = int_to_ptr.vmem [resolvable:$true] %s864_s27 }
 0x331   :  { %v375_v0 = vpop.f32.mrf.mxu2  ;;  %v437_v1 = vpop.f32.mrf.mxu0 }
 0x341   :  { %v497_v3 = vpop.f32.mrf.mxu2 }
 0x343   :  { %v556_v2 = vpop.f32.mrf.mxu0 }
 0x344   :  { %560 = vst.msk [vmem:[#allocation2 + $0x8] sm:$0xff] %vm259_vm1, %v556_v2  ;;  %v967_v2 = vld [vmem:[%s1440_s11] ss:$0 sm:$0xff] }
 0x349   :  { %v499_v6 = vpop.f32.mrf.mxu2 }
 0x34b   :  { %v558_v7 = vpop.f32.mrf.mxu0 }
 0x351   :  { %v622_v8 = vpop.f32.mrf.mxu2 }
 0x352   :  { %627 = vrot.lane.b32.xlu0 %v622_v8, %s1192_s24 }
 0x354   :  { %v683_v9 = vpop.f32.mrf.mxu0 }
 0x355   :  { %688 = vrot.lane.b32.xlu1 %v683_v9, %s1185_s26 }
 0x359   :  { %v624_v10 = vpop.f32.mrf.mxu2 }
 0x35a   :  { %502 = vrot.lane.b32.xlu0 %v497_v3, %s1199_s7 }
 0x35c   :  { %v685_v11 = vpop.f32.mrf.mxu0 }
 0x382   :  { %v744_v12 = vpop.f32.mrf.mxu2 }
 0x383   :  { %749 = vrot.lane.b32.xlu1 %v744_v12, %s1199_s7 }
 0x384   :  { %v379_v13 = vpop.permute.xlu2 %378 }
 0x385   :  { %382 = vst.msk [vmem:[#allocation2] sm:$0xff] %vm381_vm3, %v379_v13 }
 0x38a   :  { %v746_v14 = vpop.f32.mrf.mxu2 }
 0x39c   :  { %v441_v15 = vpop.permute.xlu0 %440 }
 0x39d   :  { %444 = vst.msk [vmem:[#allocation2] sm:$0xff] %vm443_vm4, %v441_v15 }
 0x3c4   :  { %v628_v16 = vpop.permute.xlu0 %627 }
 0x3c5   :  { %630 = vst.msk [vmem:[#allocation2 + $0x8] sm:$0xff] %vm381_vm3, %v628_v16 }
 0x3c7   :  { %v689_v17 = vpop.permute.xlu1 %688 }
 0x3c8   :  { %691 = vst.msk [vmem:[#allocation2 + $0x8] sm:$0xff] %vm443_vm4, %v689_v17 }
 0x3cc   :  { %v503_v18 = vpop.permute.xlu0 %502 }
 0x3cd   :  { %506 = vst.msk [vmem:[#allocation2] sm:$0xff] %vm505_vm5, %v503_v18 }
 0x3d4   :  { %v753_v22 = vld [vmem:[#allocation2] sm:$0xff] }
 0x3f5   :  { %v750_v21 = vpop.permute.xlu1 %749 }
 0x3f6   :  { %752 = vst.msk [vmem:[#allocation2 + $0x8] sm:$0xff] %vm505_vm5, %v750_v21 }
 0x3fd   :  { %v754_v23 = vld [vmem:[#allocation2 + $0x8] sm:$0xff] }
 0x3fe   :  { %v755_v24 = vpack.c.bf16 %v754_v23, %v753_v22 }
 0x400   :  { %933 = vmatmul.msk.bf16.vlgmr.msra.gmra.mxu3 %vm162_vm0, %v755_v24 }
 0x483   :  { %v788_v26 = vpop.f32.mrf.mxu3 }
 0x484   :  { %v789_v27 = vadd.f32 %v965_v25, %v788_v26 }
 0x486   :  { %v793_v28 = vadd.f32 %v789_v27, %v1290_v4 }
 0x488   :  { %v795_v29 = vsel %vm162_vm0, %v793_v28, 0.0 }
 0x489   :  { %796 = vadd.xlane.f32.xlu2 %v795_v29 }
 0x48b   :  { %v790_v30 = vpop.f32.mrf.mxu3 }
 0x48c   :  { %v791_v31 = vadd.f32 %v965_v25, %v790_v30 }
 0x48e   :  { %v794_v32 = vadd.f32 %v791_v31, %v1292_v5 }
 0x490   :  { %v798_v33 = vsel %vm162_vm0, %v794_v32, 0.0 }
 0x491   :  { %799 = vadd.xlane.f32.xlu0 %v798_v33 }
 0x4fc   :  { %v797_v4 = vpop.xlane.xlu2 %796 }
 0x4fd   :  { %v808_v41 = vmul.f32 %v807_v40, %v797_v4 }
 0x4ff   :  { %v810_v42 = vsub.f32 %v793_v28, %v808_v41 }
 0x501   :  { %v812_v43 = vmul.f32 %v810_v42, %v810_v42 }
 0x503   :  { %v814_v44 = vsel %vm162_vm0, %v812_v43, 0.0 }
 0x504   :  { %v800_v45 = vpop.xlane.xlu0 %799  ;;  %815 = vadd.xlane.f32.xlu1 %v814_v44 }
 0x505   :  { %v809_v5 = vmul.f32 %v807_v40, %v800_v45 }
 0x507   :  { %v811_v46 = vsub.f32 %v794_v32, %v809_v5 }
 0x509   :  { %v813_v47 = vmul.f32 %v811_v46, %v811_v46 }
 0x50b   :  { %v817_v48 = vsel %vm162_vm0, %v813_v47, 0.0 }
 0x50c   :  { %818 = vadd.xlane.f32.xlu2 %v817_v48 }
 0x577   :  { %v816_v49 = vpop.xlane.xlu1 %815 }
 0x578   :  { %v820_v50 = vmul.f32 %v816_v49, %v807_v40 }
 0x57a   :  { %v822_v51 = vadd.f32 1e-12, %v820_v50 }
 0x57c   :  { %1002 = vrsqrt.f32 %v822_v51  ;;  %vm830_vm8 = vweird.f32 %v822_v51 }
 0x57f   :  { %v819_v52 = vpop.xlane.xlu2 %818 }
 0x580   :  { %v821_v53 = vmul.f32 %v819_v52, %v807_v40 }
 0x582   :  { %v1003_v54 = vpop.eup %1002  ;;  %v823_v55 = vadd.f32 1e-12, %v821_v53 }
 0x583   :  { %v825_v56 = vmul.f32 %v1003_v54, %v822_v51  ;;  %vm831_vm7 = vweird.f32 %v1003_v54 }
 0x584   :  { %1004 = vrsqrt.f32 %v823_v55  ;;  %vm832_vm9 = vmor %vm830_vm8, %vm831_vm7  ;;  %vm840_vm11 = vweird.f32 %v823_v55 }
 0x585   :  { %v826_v57 = vmul.f32 %v1003_v54, %v825_v56 }
 0x587   :  { %v827_v58 = vmul.f32 0.5, %v826_v57 }
 0x589   :  { %v828_v59 = vsub.f32 1.5, %v827_v58 }
 0x58a   :  { %v1005_v60 = vpop.eup %1004 }
 0x58b   :  { %v829_v61 = vmul.f32 %v1003_v54, %v828_v59  ;;  %v835_v62 = vmul.f32 %v1005_v60, %v823_v55  ;;  %vm841_vm10 = vweird.f32 %v1005_v60 }
 0x58c   :  { %vm842_vm12 = vmor %vm840_vm11, %vm841_vm10 }
 0x58d   :  { %v833_v0 = vsel %vm832_vm9, %v1003_v54, %v829_v61  ;;  %v836_v1 = vmul.f32 %v1005_v60, %v835_v62 }
 0x58e   :  { %v844_v3 = vmul.f32 %v833_v0, %v810_v42 }
 0x58f   :  { %v837_v6 = vmul.f32 0.5, %v836_v1 }
 0x590   :  { %v850_v7 = vmul.f32 %v966_v63, %v844_v3 }
 0x591   :  { %v838_v8 = vsub.f32 1.5, %v837_v6 }
 0x592   :  { %v856_v9 = vadd.f32 %v967_v2, %v850_v7 }
 0x593   :  { %v839_v10 = vmul.f32 %v1005_v60, %v838_v8 }
 0x594   :  { %858 = vst.msk [vmem:[#allocation14] sm:$0xff] %vm162_vm0, %v856_v9 }
 0x595   :  { %v843_v11 = vsel %vm842_vm12, %v1005_v60, %v839_v10 }
 0x596   :  { %v845_v12 = vmul.f32 %v843_v11, %v811_v46 }
 0x598   :  { %v851_v13 = vmul.f32 %v966_v63, %v845_v12 }
 0x59a   :  { %v857_v14 = vadd.f32 %v967_v2, %v851_v13 }
 0x59c   :  { %859 = vst.msk [vmem:[#allocation14 + $0x8] sm:$0xff] %vm162_vm0, %v857_v14 }
 0x59d   :  { %872 = dma.vmem_to_hbm [thread:$0]  %s865_s27, 256, %s867_s30, [#allocation5], %s1191_s4, %s1191_s4, %s1192_s24  }
 0x59e   :  { %1182 = dma.done.wait [#allocation5], 256  }
 0x59f   :  { %1183 = vsyncadd [#allocation5], 4294967040 }
 0x5a0   :  { %877 = vsyncpa [#allocation4], 1 }
 0x5a1   :  { %878 = vsyncpa [#allocation7], 1 }
 0x5a2   :  { %879 = vsyncpa [#allocation10], 1 }
 0x5a3   :  { %880 = vsyncpa [#allocation13], 1 }
 0x5a4   :  { %881 = vsyncpa [#allocation5], 1 }

</bundles_post_ra>
